<compile_context>
chip_gen: v7x
topology: tpu7x:2x2x1
jax: 0.10.0
libtpu: 0.0.40
codegen_flags: <defaults>
</compile_context>

<pallas_src>
import numpy as np
import jax
import jax.numpy as jnp
from jax import lax
from jax.experimental import pallas as pl
from jax.experimental.pallas import tpu as pltpu

LANE = 128


def _round_up(x, m):
    return ((x + m - 1) // m) * m


def _lr_kernel(idx_ref, off_ref, bias_ref, w_ref, out_ref):
    """One batch tile of FeaturesLinear + sigmoid.

    idx_ref : (F, TB)   int32, VMEM  per-field raw indices, batch on lanes
    off_ref : (1, F)    int32, SMEM  field offsets
    bias_ref: (1, 1)    f32,   SMEM
    w_ref   : (128, R)  f32,   VMEM  w_ref[c, r] == weight[r*128 + c] (resident)
    out_ref : (1, TB)   f32,   VMEM  lane-dense sigmoid(logits)
    """
    F, TB = idx_ref.shape
    n_sub, R = w_ref.shape

    idx = idx_ref[...]                                          # (F, TB)
    w = w_ref[...]                                              # (128, R)
    sub_iota = lax.broadcasted_iota(jnp.int32, (n_sub, TB), 0)  # chunk-local row id

    # Global embedding row id per field, hoisted out of the chunk loop.
    gs = [idx[f:f + 1, :] + off_ref[0, f] for f in range(F)]    # each (1, TB)

    # Accumulate selected weights into a (128, TB) plane on the VPU; do a
    # single sublane reduce (XLU) at the end instead of one per (field, chunk).
    acc = jnp.zeros((n_sub, TB), jnp.float32)
    # F and R are small & static in the one-hot regime -> unrolled VPU loop,
    # never materializing a full (TB, total_dims) counts matrix.
    for r in range(R):
        row_id = sub_iota + r * n_sub if r else sub_iota        # (128, TB)
        w_col = w[:, r:r + 1]                                   # (128, 1)
        for f in range(F):
            acc = acc + jnp.where(row_id == gs[f], w_col, 0.0)  # one-hot select

    logit = jnp.sum(acc, axis=0, keepdims=True)                 # (1, TB), one XLU reduce
    out_ref[...] = jax.nn.sigmoid(logit + bias_ref[0, 0])


def logistic_regression_forward(x_idx, weight, bias, offsets, *, batch_tile=512):
    """x_idx: (B, F) int; weight: (total_dims, 1) or (total_dims,); bias: (1,)."""
    B, F = x_idx.shape
    w_vec = jnp.asarray(weight, jnp.float32).reshape(-1)
    total_dims = w_vec.shape[0]

    # Near-lane-dense, column-sliceable weight layout: w2[c, r] = w[r*128 + c].
    R = pl.cdiv(total_dims, LANE)
    t_pad = R * LANE
    w2 = jnp.zeros((t_pad,), jnp.float32).at[:total_dims].set(w_vec)
    w2 = w2.reshape(R, LANE).T                                  # (128, R)

    # Batch tile: multiple of 128 (lane width). 512 keeps per-step VMEM far
    # under v7x's 64 MiB; bump batch_tile to 1024-2048 on v5e/v6e for fewer
    # grid steps if desired.
    assert batch_tile % LANE == 0
    tb = min(batch_tile, _round_up(B, LANE))
    b_pad = _round_up(B, tb)

    # Indices laid out (F, B): batch on the lane axis (dense idx/output blocks).
    idx = jnp.zeros((F, b_pad), jnp.int32).at[:, :B].set(
        jnp.asarray(x_idx, jnp.int32).T)
    off_2d = jnp.asarray(offsets, jnp.int32).reshape(1, F)
    bias_2d = jnp.asarray(bias, jnp.float32).reshape(1, 1)

    out = pl.pallas_call(
        _lr_kernel,
        out_shape=jax.ShapeDtypeStruct((1, b_pad), jnp.float32),
        grid=(b_pad // tb,),
        in_specs=[
            pl.BlockSpec((F, tb), lambda i: (0, i)),             # idx tile (VMEM)
            pl.BlockSpec(memory_space=pltpu.MemorySpace.SMEM),   # offsets
            pl.BlockSpec(memory_space=pltpu.MemorySpace.SMEM),   # bias
            pl.BlockSpec(memory_space=pltpu.MemorySpace.VMEM),   # weight (resident)
        ],
        out_specs=pl.BlockSpec((1, tb), lambda i: (0, i)),       # lane-dense output
        compiler_params=pltpu.CompilerParams(
            dimension_semantics=("parallel",),
            vmem_limit_bytes=32 * 1024 * 1024,
        ),
    )(idx, off_2d, bias_2d, w2)

    return out[0, :B]                                            # squeeze -> (B,)


if __name__ == "__main__":
    # Small synthetic config consistent with the module's forward signature.
    field_dims = (10, 20, 30, 40)          # num_fields = 4, sum = 100
    num_fields = len(field_dims)
    total_dims = int(np.sum(field_dims))
    batch = 2

    key = jax.random.PRNGKey(0)
    k_w, k_x = jax.random.split(key)

    # Deterministic parameter init (Embedding ~ N(0,1), bias = zeros as in torch).
    weight = jax.random.normal(k_w, (total_dims, 1), dtype=jnp.float32)
    bias = jnp.zeros((1,), dtype=jnp.float32)

    # Per-field offsets: (0, cumsum(field_dims)[:-1])
    offsets = jnp.asarray(
        np.concatenate(([0], np.cumsum(field_dims)[:-1])), dtype=jnp.int32)

    # Input: per-field indices in [0, field_dims[f])
    x = jnp.stack(
        [jax.random.randint(jax.random.fold_in(k_x, f), (batch,), 0, field_dims[f])
         for f in range(num_fields)],
        axis=1,
    ).astype(jnp.int32)  # (batch, num_fields)

    out = logistic_regression_forward(x, weight, bias, offsets)
    out = jax.block_until_ready(out)

    # Sanity check against a pure-JAX reference of the same math.
    ref = jax.nn.sigmoid(jnp.sum(weight[x + offsets[None, :], 0], axis=1) + bias[0])
    assert out.shape == (batch,)
    np.testing.assert_allclose(np.asarray(out), np.asarray(ref), rtol=1e-5, atol=1e-5)

    print("KERNEL_OK")
</pallas_src>

<mosaic_0001>
module attributes {stable_mosaic.version = 11 : i64} {
  func.func @_lr_kernel(%arg0: i32, %arg1: memref<4x128xi32, #tpu.memory_space<vmem>>, %arg2: memref<1x4xi32, #tpu.memory_space<smem>>, %arg3: memref<1x1xf32, #tpu.memory_space<smem>>, %arg4: memref<128x1xf32, #tpu.memory_space<vmem>>, %arg5: memref<1x128xf32, #tpu.memory_space<vmem>>) attributes {dimension_semantics = [#tpu.dimension_semantics<parallel>], iteration_bounds = array<i64: 1>, scalar_prefetch = 0 : i64, scratch_operands = 0 : i64, tpu.core_type = #tpu.core_type<tc>, window_params = [{transform_indices = @transform_0, window_bounds = array<i64: 4, 128>}, {transform_indices = @transform_1, window_bounds = array<i64: 1, 4>}, {transform_indices = @transform_2, window_bounds = array<i64: 1, 1>}, {pipeline_mode = #tpu.pipeline_mode<synchronous>, transform_indices = @transform_3, window_bounds = array<i64: 128, 1>}, {transform_indices = @transform_4, window_bounds = array<i64: 1, 128>}]} {
    %c0 = arith.constant 0 : index
    %c0_0 = arith.constant 0 : index
    %0 = vector.load %arg1[%c0, %c0_0] : memref<4x128xi32, #tpu.memory_space<vmem>>, vector<4x128xi32>
    %c0_1 = arith.constant 0 : index
    %c0_2 = arith.constant 0 : index
    %1 = vector.load %arg4[%c0_1, %c0_2] : memref<128x1xf32, #tpu.memory_space<vmem>>, vector<128x1xf32>
    %2 = tpu.iota {dimensions = array<i32: 0>} : vector<128x128xi32>
    %3 = vector.extract_strided_slice %0 {offsets = [0, 0], sizes = [1, 128], strides = [1, 1]} : vector<4x128xi32> to vector<1x128xi32>
    %c0_3 = arith.constant 0 : index
    %c0_4 = arith.constant 0 : index
    %4 = memref.load %arg2[%c0_3, %c0_4] : memref<1x4xi32, #tpu.memory_space<smem>>
    %5 = vector.broadcast %4 : i32 to vector<1x128xi32>
    %6 = arith.addi %3, %5 : vector<1x128xi32>
    %7 = vector.extract_strided_slice %0 {offsets = [1, 0], sizes = [1, 128], strides = [1, 1]} : vector<4x128xi32> to vector<1x128xi32>
    %c0_5 = arith.constant 0 : index
    %c1 = arith.constant 1 : index
    %8 = memref.load %arg2[%c0_5, %c1] : memref<1x4xi32, #tpu.memory_space<smem>>
    %9 = vector.broadcast %8 : i32 to vector<1x128xi32>
    %10 = arith.addi %7, %9 : vector<1x128xi32>
    %11 = vector.extract_strided_slice %0 {offsets = [2, 0], sizes = [1, 128], strides = [1, 1]} : vector<4x128xi32> to vector<1x128xi32>
    %c0_6 = arith.constant 0 : index
    %c2 = arith.constant 2 : index
    %12 = memref.load %arg2[%c0_6, %c2] : memref<1x4xi32, #tpu.memory_space<smem>>
    %13 = vector.broadcast %12 : i32 to vector<1x128xi32>
    %14 = arith.addi %11, %13 : vector<1x128xi32>
    %15 = vector.extract_strided_slice %0 {offsets = [3, 0], sizes = [1, 128], strides = [1, 1]} : vector<4x128xi32> to vector<1x128xi32>
    %c0_7 = arith.constant 0 : index
    %c3 = arith.constant 3 : index
    %16 = memref.load %arg2[%c0_7, %c3] : memref<1x4xi32, #tpu.memory_space<smem>>
    %17 = vector.broadcast %16 : i32 to vector<1x128xi32>
    %18 = arith.addi %15, %17 : vector<1x128xi32>
    %cst = arith.constant 0.000000e+00 : f32
    %19 = vector.broadcast %cst : f32 to vector<128x128xf32>
    %20 = vector.broadcast %6 : vector<1x128xi32> to vector<128x128xi32>
    %21 = arith.cmpi eq, %2, %20 : vector<128x128xi32>
    %cst_8 = arith.constant 0.000000e+00 : f32
    %22 = vector.shape_cast %1 : vector<128x1xf32> to vector<128x1xf32>
    %23 = vector.broadcast %22 : vector<128x1xf32> to vector<128x128xf32>
    %24 = vector.broadcast %cst_8 : f32 to vector<128x128xf32>
    %25 = arith.select %21, %23, %24 : vector<128x128xi1>, vector<128x128xf32>
    %26 = arith.addf %19, %25 : vector<128x128xf32>
    %27 = vector.broadcast %10 : vector<1x128xi32> to vector<128x128xi32>
    %28 = arith.cmpi eq, %2, %27 : vector<128x128xi32>
    %cst_9 = arith.constant 0.000000e+00 : f32
    %29 = vector.shape_cast %1 : vector<128x1xf32> to vector<128x1xf32>
    %30 = vector.broadcast %29 : vector<128x1xf32> to vector<128x128xf32>
    %31 = vector.broadcast %cst_9 : f32 to vector<128x128xf32>
    %32 = arith.select %28, %30, %31 : vector<128x128xi1>, vector<128x128xf32>
    %33 = arith.addf %26, %32 : vector<128x128xf32>
    %34 = vector.broadcast %14 : vector<1x128xi32> to vector<128x128xi32>
    %35 = arith.cmpi eq, %2, %34 : vector<128x128xi32>
    %cst_10 = arith.constant 0.000000e+00 : f32
    %36 = vector.shape_cast %1 : vector<128x1xf32> to vector<128x1xf32>
    %37 = vector.broadcast %36 : vector<128x1xf32> to vector<128x128xf32>
    %38 = vector.broadcast %cst_10 : f32 to vector<128x128xf32>
    %39 = arith.select %35, %37, %38 : vector<128x128xi1>, vector<128x128xf32>
    %40 = arith.addf %33, %39 : vector<128x128xf32>
    %41 = vector.broadcast %18 : vector<1x128xi32> to vector<128x128xi32>
    %42 = arith.cmpi eq, %2, %41 : vector<128x128xi32>
    %cst_11 = arith.constant 0.000000e+00 : f32
    %43 = vector.shape_cast %1 : vector<128x1xf32> to vector<128x1xf32>
    %44 = vector.broadcast %43 : vector<128x1xf32> to vector<128x128xf32>
    %45 = vector.broadcast %cst_11 : f32 to vector<128x128xf32>
    %46 = arith.select %42, %44, %45 : vector<128x128xi1>, vector<128x128xf32>
    %47 = arith.addf %40, %46 : vector<128x128xf32>
    %cst_12 = arith.constant dense<0.000000e+00> : vector<128xf32>
    %48 = vector.multi_reduction <add>, %47, %cst_12 [0] : vector<128x128xf32> to vector<128xf32>
    %49 = vector.shape_cast %48 : vector<128xf32> to vector<1x128xf32>
    %c0_13 = arith.constant 0 : index
    %c0_14 = arith.constant 0 : index
    %50 = memref.load %arg3[%c0_13, %c0_14] : memref<1x1xf32, #tpu.memory_space<smem>>
    %51 = vector.broadcast %50 : f32 to vector<1x128xf32>
    %52 = arith.addf %49, %51 : vector<1x128xf32>
    %53 = arith.negf %52 : vector<1x128xf32>
    %54 = math.exp %53 : vector<1x128xf32>
    %cst_15 = arith.constant 1.000000e+00 : f32
    %55 = vector.broadcast %cst_15 : f32 to vector<1x128xf32>
    %56 = arith.addf %55, %54 : vector<1x128xf32>
    %57 = arith.divf %55, %56 : vector<1x128xf32>
    %c0_16 = arith.constant 0 : index
    %c0_17 = arith.constant 0 : index
    %58 = vector.load %arg5[%c0_16, %c0_17] : memref<1x128xf32, #tpu.memory_space<vmem>>, vector<1x128xf32>
    tpu.vector_store %arg5[%c0_16, %c0_17], %57 {strides = array<i32>} : memref<1x128xf32, #tpu.memory_space<vmem>>, vector<1x128xf32>,
    return
  }
  func.func @transform_0(%arg0: i32) -> (i32, i32) {
    %c0_i32 = arith.constant 0 : i32
    %c0_i32_0 = arith.constant 0 : i32
    return %c0_i32, %arg0 : i32, i32
  }
  func.func @transform_1(%arg0: i32) -> (i32, i32) {
    %c0_i32 = arith.constant 0 : i32
    %c0_i32_0 = arith.constant 0 : i32
    %c0_i32_1 = arith.constant 0 : i32
    return %c0_i32, %c0_i32_0 : i32, i32
  }
  func.func @transform_2(%arg0: i32) -> (i32, i32) {
    %c0_i32 = arith.constant 0 : i32
    %c0_i32_0 = arith.constant 0 : i32
    %c0_i32_1 = arith.constant 0 : i32
    return %c0_i32, %c0_i32_0 : i32, i32
  }
  func.func @transform_3(%arg0: i32) -> (i32, i32) {
    %c0_i32 = arith.constant 0 : i32
    %c0_i32_0 = arith.constant 0 : i32
    %c0_i32_1 = arith.constant 0 : i32
    return %c0_i32, %c0_i32_0 : i32, i32
  }
  func.func @transform_4(%arg0: i32) -> (i32, i32) {
    %c0_i32 = arith.constant 0 : i32
    %c0_i32_0 = arith.constant 0 : i32
    return %c0_i32, %arg0 : i32, i32
  }
}

</mosaic_0001>

<bundles_post_ra>
// kernel: tpu_custom_call.1
= control target key start
LH: loop header
LB: loop body
LE: loop exit
PB: predicated region body
PF: predicated region fallthrough
CT: control target
= control target key end

     0   :  { %10 = vsyncpa [#allocation5], 0  ;;  %s939_s0 = inlined_call_operand.vmem [shape: s32[4,128], index: 0, kind: input, shape index: {}]   ;;  %s940_s1 = inlined_call_operand.vmem [shape: s32[1,4], index: 1, kind: input, shape index: {}]   ;;  %s941_s2 = inlined_call_operand.<no memory space> [shape: f32[1,1], index: 2, kind: input, shape index: {}]   ;;  %s942_s3 = inlined_call_operand.vmem [shape: f32[128,1], index: 3, kind: input, shape index: {}]   ;;  %s943_s4 = inlined_call_operand.hbm [shape: f32[1,128], index: 4, kind: output, shape index: {}]  }
   0x1   :  { %11 = vsyncpa [#allocation4], 0  ;;  %s20_s17 = sshll.u32 %s940_s1, 4  ;;  %s21_s17 = int_to_ptr.vmem [resolvable:$true] %s20_s17 }
   0x2   :  { %s425_s18 = scalar_lea.vmem %s21_s17, 16  ;;  %p430_p1 = scmp.lt.s32.totalorder %s21_s17, %s21_s17 }
   0x3   :  { %p426_p0 = scmp.ne.s32.totalorder %s21_s17, %s425_s18  ;;  %p431_p2 = scmp.lt.s32.totalorder %s425_s18, %s425_s18 }
   0x5   :  { %p432_p3 = por %p431_p2, %p430_p1 }
   0x7   :  { %p433_p4 = pnand %p432_p3, %p426_p0 }
   0x9   :  { %436 = shalt.err (!%p433_p4)
}
   0xa   :  { %s463_s19 = smov [#allocation3]  }
   0xb   :  { %23 = dma.vmem_to_smem %s21_s17, 16, %s463_s19, [#allocation5]  }
   0xc   :  { %459 = dma.done.wait [#allocation5], 16  }
   0xd   :  { %460 = vsyncadd [#allocation5], 4294967280 }
   0xe   :  { %31 = sfence }
   0xf   :  { %v35_v0 = vld [vmem:[%s942_s3 + $0x10] sm:$0xff]  ;;  %v33_v1 = vld [vmem:[%s942_s3] sm:$0xff]  ;;  %v464_v2 = vmov 0   ;;  %v36_v3 = vld [vmem:[%s942_s3 + $0x18] sm:$0xff]  ;;  %s66_s24 = sld [smem:[#allocation3]]  ;;  %s412_s25 = sld [smem:[#allocation3 + $0x1]]  ;;  %v49_v17 = vlaneseq }
  0x10   :  { %420 = vset.pattern.permute.xlu1 %v464_v2  ;;  %419 = vset.pattern.permute.xlu0 %v464_v2  ;;  %v34_v4 = vld [vmem:[%s942_s3 + $0x8] sm:$0xff]  ;;  %v37_v6 = vld [vmem:[%s942_s3 + $0x20] sm:$0xff]  ;;  %v40_v7 = vld [vmem:[%s942_s3 + $0x38] sm:$0xff]  ;;  %s413_s26 = sld [smem:[#allocation3 + $0x2]]  ;;  %s414_s27 = sld [smem:[#allocation3 + $0x3]] }
  0x11   :  { %110 = vperm.xlu1 %420, %v35_v0   ;;  %100 = vperm.xlu0 %419, %v33_v1   ;;  %v38_v5 = vld [vmem:[%s942_s3 + $0x28] sm:$0xff]  ;;  %v39_v8 = vld [vmem:[%s942_s3 + $0x30] sm:$0xff]  ;;  %v41_v10 = vld [vmem:[%s942_s3 + $0x40] sm:$0xff]  ;;  %v542_v18 = vshrl.u32 %v49_v17, 7  ;;  %s465_s30 = smov [#allocation6]  }
  0x12   :  { %v42_v9 = vld [vmem:[%s942_s3 + $0x48] sm:$0xff]  ;;  %v44_v11 = vld [vmem:[%s942_s3 + $0x58] sm:$0xff]  ;;  %v43_v12 = vld [vmem:[%s942_s3 + $0x50] sm:$0xff]  ;;  %s403_s5 = sshll.u32 %s465_s30, 4  ;;  %s404_s5 = int_to_ptr.vmem [resolvable:$true] %s403_s5 }
  0x13   :  { %v46_v13 = vld [vmem:[%s942_s3 + $0x68] sm:$0xff]  ;;  %v45_v14 = vld [vmem:[%s942_s3 + $0x60] sm:$0xff]  ;;  %v48_v15 = vld [vmem:[%s942_s3 + $0x78] sm:$0xff]  ;;  %v80_v24 = vsub.s32 0, %v542_v18  ;;  %v212_v26 = vsub.s32 1, %v542_v18  ;;  %v264_v28 = vsub.s32 2, %v542_v18  ;;  %p442_p6 = scmp.lt.s32.totalorder %s404_s5, %s404_s5 }
  0x14   :  { %v47_v16 = vld [vmem:[%s942_s3 + $0x70] sm:$0xff]  ;;  %v32_v20 = vld [vmem:[%s939_s0] sm:$0xf]  ;;  %v316_v30 = vsub.s32 3, %v542_v18  ;;  %v552_v32 = vadd.s32 16, %v542_v18  ;;  %v557_v34 = vadd.s32 24, %v542_v18 }
  0x15   :  { %115 = vperm.xlu1 %420, %v36_v3   ;;  %105 = vperm.xlu0 %419, %v34_v4   ;;  %v67_v19 = vstv %s66_s24  ;;  %v70_v21 = vstv %s412_s25  ;;  %v564_v37 = vadd.s32 8, %v542_v18  ;;  %v569_v39 = vadd.s32 40, %v542_v18  ;;  %s437_s6 = scalar_lea.vmem %s404_s5, 16  ;;  %s441_s7 = scalar_lea.vmem %s404_s5, 32 }
  0x16   :  { %v73_v22 = vstv %s413_s26  ;;  %v76_v23 = vstv %s414_s27  ;;  %v68_v25 = vadd.s32 %v67_v19, %v32_v20  ;;  %v71_v27 = vadd.s32 %v70_v21, %v32_v20  ;;  %p438_p5 = scmp.ne.s32.totalorder %s404_s5, %s437_s6  ;;  %p443_p7 = scmp.lt.s32.totalorder %s441_s7, %s437_s6 }
  0x17   :  { %v74_v29 = vadd.s32 %v73_v22, %v32_v20  ;;  %v77_v31 = vadd.s32 %v76_v23, %v32_v20  ;;  %v578_v40 = vadd.s32 32, %v542_v18  ;;  %v595_v41 = vadd.s32 56, %v542_v18 }
  0x18   :  { %v554_v33 = vrot.slane %v68_v25, %v80_v24  ;;  %v559_v35 = vrot.slane %v71_v27, %v212_v26  ;;  %v606_v44 = vadd.s32 48, %v542_v18  ;;  %v625_v47 = vadd.s32 72, %v542_v18  ;;  %p444_p8 = por %p443_p7, %p442_p6 }
  0x19   :  { %125 = vperm.xlu1 %420, %v38_v5   ;;  %120 = vperm.xlu0 %419, %v37_v6   ;;  %v561_v36 = vrot.slane %v74_v29, %v264_v28  ;;  %v566_v38 = vrot.slane %v77_v31, %v316_v30  ;;  %v648_v53 = vadd.s32 64, %v542_v18  ;;  %v661_v56 = vadd.s32 88, %v542_v18 }
  0x1a   :  { %vm84_vm0 = vcmp.eq.s32.totalorder %v552_v32, %v554_v33  ;;  %vm82_vm1 = vcmp.eq.s32.totalorder %v542_v18, %v554_v33  ;;  %vm85_vm2 = vcmp.eq.s32.totalorder %v557_v34, %v554_v33  ;;  %vm216_vm3 = vcmp.eq.s32.totalorder %v552_v32, %v559_v35  ;;  %p445_p9 = pnand %p444_p8, %p438_p5 }
  0x1b   :  { %vm268_vm4 = vcmp.eq.s32.totalorder %v552_v32, %v561_v36  ;;  %vm214_vm5 = vcmp.eq.s32.totalorder %v542_v18, %v559_v35  ;;  %vm217_vm6 = vcmp.eq.s32.totalorder %v557_v34, %v559_v35  ;;  %vm320_vm7 = vcmp.eq.s32.totalorder %v552_v32, %v566_v38 }
  0x1c   :  { %vm266_vm8 = vcmp.eq.s32.totalorder %v542_v18, %v561_v36  ;;  %vm83_vm9 = vcmp.eq.s32.totalorder %v564_v37, %v554_v33  ;;  %vm215_vm12 = vcmp.eq.s32.totalorder %v564_v37, %v559_v35  ;;  %vm267_vm13 = vcmp.eq.s32.totalorder %v564_v37, %v561_v36 }
  0x1d   :  { %135 = vperm.xlu1 %420, %v40_v7   ;;  %130 = vperm.xlu0 %419, %v39_v8   ;;  %vm87_vm15 = vcmp.eq.s32.totalorder %v569_v39, %v554_v33  ;;  %vm219_vm10 = vcmp.eq.s32.totalorder %v569_v39, %v559_v35  ;;  %vm89_vm14 = vcmp.eq.s32.totalorder %v595_v41, %v554_v33  ;;  %v675_v59 = vadd.s32 80, %v542_v18 }
  0x1e   :  { %vm223_vm11 = vcmp.eq.s32.totalorder %v625_v47, %v559_v35  ;;  %v678_v60 = vadd.s32 104, %v542_v18  ;;  %v692_v0 = vadd.s32 96, %v542_v18  ;;  %v701_v6 = vadd.s32 120, %v542_v18 }
  0x1f   :  { %v757_v29 = vadd.s32 112, %v542_v18 }
  0x21   :  { %145 = vperm.xlu1 %420, %v42_v9   ;;  %140 = vperm.xlu0 %419, %v41_v10  }
  0x25   :  { %155 = vperm.xlu1 %420, %v44_v11   ;;  %150 = vperm.xlu0 %419, %v43_v12  }
  0x29   :  { %165 = vperm.xlu1 %420, %v46_v13   ;;  %160 = vperm.xlu0 %419, %v45_v14  }
  0x2d   :  { %175 = vperm.xlu1 %420, %v48_v15   ;;  %170 = vperm.xlu0 %419, %v47_v16  }
  0x90   :  { %v111_v42 = vpop.permute.xlu1 %110  ;;  %v101_v43 = vpop.permute.xlu0 %100 }
  0x91   :  { %v178_v45 = vsel %vm82_vm1, %v101_v43, 0.0  ;;  %v230_v46 = vsel %vm214_vm5, %v101_v43, 0.0  ;;  %v180_v48 = vsel %vm84_vm0, %v111_v42, 0.0  ;;  %v232_v49 = vsel %vm216_vm3, %v111_v42, 0.0 }
  0x92   :  { %vm271_vm1 = vcmp.eq.s32.totalorder %v569_v39, %v561_v36  ;;  %vm270_vm5 = vcmp.eq.s32.totalorder %v578_v40, %v561_v36  ;;  %v246_v50 = vadd.f32 %v230_v46, %v178_v45  ;;  %vm221_vm0 = vcmp.eq.s32.totalorder %v595_v41, %v559_v35 }
  0x93   :  { %v248_v57 = vadd.f32 %v232_v49, %v180_v48  ;;  %vm322_vm3 = vcmp.eq.s32.totalorder %v578_v40, %v566_v38  ;;  %v284_v61 = vsel %vm268_vm4, %v111_v42, 0.0  ;;  %v282_v62 = vsel %vm266_vm8, %v101_v43, 0.0 }
  0x94   :  { %v639_v51 = vpop.permute.xlu1 %115  ;;  %v106_v52 = vpop.permute.xlu0 %105  ;;  %v298_v1 = vadd.f32 %v282_v62, %v246_v50  ;;  %vm273_vm4 = vcmp.eq.s32.totalorder %v595_v41, %v561_v36  ;;  %v336_v7 = vsel %vm320_vm7, %v111_v42, 0.0  ;;  %vm945_vm7 = vcmp.eq.s32.totalorder %v578_v40, %v554_v33 }
  0x95   :  { %v181_v54 = vsel %vm85_vm2, %v639_v51, 0.0  ;;  %v233_v55 = vsel %vm217_vm6, %v639_v51, 0.0  ;;  %v179_v58 = vsel %vm83_vm9, %v106_v52, 0.0  ;;  %vm272_vm2 = vcmp.eq.s32.totalorder %v606_v44, %v561_v36 }
  0x96   :  { %vm91_vm6 = vcmp.eq.s32.totalorder %v625_v47, %v554_v33  ;;  %v231_v63 = vsel %vm215_vm12, %v106_v52, 0.0  ;;  %vm323_vm9 = vcmp.eq.s32.totalorder %v569_v39, %v566_v38  ;;  %v249_v2 = vadd.f32 %v233_v55, %v181_v54 }
  0x97   :  { %v247_v3 = vadd.f32 %v231_v63, %v179_v58  ;;  %v283_v8 = vsel %vm267_vm13, %v106_v52, 0.0  ;;  %v300_v11 = vadd.f32 %v284_v61, %v248_v57  ;;  %vm944_vm12 = vcmp.eq.s32.totalorder %v542_v18, %v566_v38 }
  0x98   :  { %v126_v4 = vpop.permute.xlu1 %125  ;;  %v121_v5 = vpop.permute.xlu0 %120  ;;  %v334_v12 = vsel %vm944_vm12, %v101_v43, 0.0  ;;  %vm946_vm12 = vcmp.eq.s32.totalorder %v557_v34, %v561_v36  ;;  %vm948_vm13 = vcmp.eq.s32.totalorder %v578_v40, %v559_v35  ;;  %vm325_vm8 = vcmp.eq.s32.totalorder %v595_v41, %v566_v38 }
  0x99   :  { %v183_v9 = vsel %vm87_vm15, %v126_v4, 0.0  ;;  %v235_v10 = vsel %vm219_vm10, %v126_v4, 0.0  ;;  %v299_v13 = vadd.f32 %v283_v8, %v247_v3  ;;  %v182_v14 = vsel %vm945_vm7, %v121_v5, 0.0 }
  0x9a   :  { %vm274_vm15 = vcmp.eq.s32.totalorder %v648_v53, %v561_v36  ;;  %v285_v15 = vsel %vm946_vm12, %v639_v51, 0.0  ;;  %vm947_vm7 = vcmp.eq.s32.totalorder %v564_v37, %v566_v38  ;;  %v251_v17 = vadd.f32 %v235_v10, %v183_v9 }
  0x9b   :  { %v335_v16 = vsel %vm947_vm7, %v106_v52, 0.0  ;;  %v234_v19 = vsel %vm948_vm13, %v121_v5, 0.0  ;;  %v350_v20 = vadd.f32 %v334_v12, %v298_v1  ;;  %v301_v21 = vadd.f32 %v285_v15, %v249_v2 }
  0x9c   :  { %v351_v22 = vadd.f32 %v335_v16, %v299_v13  ;;  %v250_v23 = vadd.f32 %v234_v19, %v182_v14  ;;  %v136_v24 = vpop.permute.xlu1 %135  ;;  %v131_v25 = vpop.permute.xlu0 %130  ;;  %vm275_vm12 = vcmp.eq.s32.totalorder %v625_v47, %v561_v36  ;;  %vm92_vm7 = vcmp.eq.s32.totalorder %v675_v59, %v554_v33 }
  0x9d   :  { %v286_v26 = vsel %vm270_vm5, %v121_v5, 0.0  ;;  %v185_v27 = vsel %vm89_vm14, %v136_v24, 0.0  ;;  %v237_v28 = vsel %vm221_vm0, %v136_v24, 0.0  ;;  %v352_v30 = vadd.f32 %v336_v7, %v300_v11 }
  0x9e   :  { %v366_v31 = vadd.f32 %v351_v22, %v350_v20  ;;  %v287_v32 = vsel %vm271_vm1, %v126_v4, 0.0  ;;  %v302_v37 = vadd.f32 %v286_v26, %v250_v23  ;;  %vm276_vm14 = vcmp.eq.s32.totalorder %v675_v59, %v561_v36 }
  0x9f   :  { %vm949_vm10 = vcmp.eq.s32.totalorder %v557_v34, %v566_v38  ;;  %v303_v42 = vadd.f32 %v287_v32, %v251_v17  ;;  %vm950_vm1 = vcmp.eq.s32.totalorder %v606_v44, %v554_v33  ;;  %vm951_vm5 = vcmp.eq.s32.totalorder %v606_v44, %v559_v35 }
  0xa0   :  { %v337_v18 = vsel %vm949_vm10, %v639_v51, 0.0  ;;  %v184_v43 = vsel %vm950_vm1, %v131_v25, 0.0  ;;  %v236_v45 = vsel %vm951_vm5, %v131_v25, 0.0  ;;  %vm277_vm13 = vcmp.eq.s32.totalorder %v661_v56, %v561_v36  ;;  %v146_v52 = vpop.permute.xlu1 %145  ;;  %v141_v34 = vpop.permute.xlu0 %140 }
  0xa1   :  { %v353_v46 = vadd.f32 %v337_v18, %v301_v21  ;;  %v367_v48 = vadd.f32 %v366_v31, %v352_v30  ;;  %v253_v49 = vadd.f32 %v237_v28, %v185_v27  ;;  %v252_v50 = vadd.f32 %v236_v45, %v184_v43 }
  0xa2   :  { %vm327_vm10 = vcmp.eq.s32.totalorder %v625_v47, %v566_v38  ;;  %vm94_vm0 = vcmp.eq.s32.totalorder %v692_v0, %v554_v33  ;;  %vm226_vm1 = vcmp.eq.s32.totalorder %v692_v0, %v559_v35  ;;  %v338_v51 = vsel %vm322_vm3, %v121_v5, 0.0 }
  0xa3   :  { %v288_v54 = vsel %vm272_vm2, %v131_v25, 0.0  ;;  %v187_v55 = vsel %vm91_vm6, %v146_v52, 0.0  ;;  %v239_v57 = vsel %vm223_vm11, %v146_v52, 0.0  ;;  %v339_v58 = vsel %vm323_vm9, %v126_v4, 0.0 }
  0xa4   :  { %v354_v61 = vadd.f32 %v338_v51, %v302_v37  ;;  %v368_v62 = vadd.f32 %v367_v48, %v353_v46  ;;  %v304_v40 = vadd.f32 %v288_v54, %v252_v50  ;;  %vm328_vm3 = vcmp.eq.s32.totalorder %v675_v59, %v566_v38  ;;  %v156_v8 = vpop.permute.xlu1 %155  ;;  %v151_v9 = vpop.permute.xlu0 %150 }
  0xa5   :  { %vm97_vm6 = vcmp.eq.s32.totalorder %v701_v6, %v554_v33  ;;  %v355_v63 = vadd.f32 %v339_v58, %v303_v42  ;;  %v289_v39 = vsel %vm273_vm4, %v136_v24, 0.0  ;;  %vm952_vm11 = vcmp.eq.s32.totalorder %v648_v53, %v554_v33 }
  0xa6   :  { %v186_v1 = vsel %vm952_vm11, %v141_v34, 0.0  ;;  %vm953_vm9 = vcmp.eq.s32.totalorder %v648_v53, %v559_v35  ;;  %v369_v3 = vadd.f32 %v368_v62, %v354_v61  ;;  %v305_v4 = vadd.f32 %v289_v39, %v253_v49 }
  0xa7   :  { %v238_v2 = vsel %vm953_vm9, %v141_v34, 0.0  ;;  %v255_v5 = vadd.f32 %v239_v57, %v187_v55  ;;  %vm96_vm5 = vcmp.eq.s32.totalorder %v757_v29, %v554_v33  ;;  %vm228_vm11 = vcmp.eq.s32.totalorder %v757_v29, %v559_v35 }
  0xa8   :  { %v254_v7 = vadd.f32 %v238_v2, %v186_v1  ;;  %vm954_vm9 = vcmp.eq.s32.totalorder %v606_v44, %v566_v38  ;;  %v290_v11 = vsel %vm274_vm15, %v141_v34, 0.0  ;;  %vm955_vm2 = vcmp.eq.s32.totalorder %v661_v56, %v554_v33  ;;  %v161_v26 = vpop.permute.xlu0 %160 }
  0xa9   :  { %v340_v10 = vsel %vm954_vm9, %v131_v25, 0.0  ;;  %v189_v12 = vsel %vm955_vm2, %v156_v8, 0.0  ;;  %vm956_vm4 = vcmp.eq.s32.totalorder %v661_v56, %v559_v35  ;;  %v341_v14 = vsel %vm325_vm8, %v136_v24, 0.0  ;;  %v166_v25 = vpop.permute.xlu1 %165 }
  0xaa   :  { %v241_v13 = vsel %vm956_vm4, %v156_v8, 0.0  ;;  %v356_v15 = vadd.f32 %v340_v10, %v304_v40  ;;  %v370_v16 = vadd.f32 %v369_v3, %v355_v63  ;;  %v306_v44 = vadd.f32 %v290_v11, %v254_v7 }
  0xab   :  { %vm330_vm9 = vcmp.eq.s32.totalorder %v692_v0, %v566_v38  ;;  %vm280_vm15 = vcmp.eq.s32.totalorder %v757_v29, %v561_v36  ;;  %v291_v17 = vsel %vm275_vm12, %v146_v52, 0.0  ;;  %v257_v19 = vadd.f32 %v241_v13, %v189_v12 }
  0xac   :  { %v188_v20 = vsel %vm92_vm7, %v151_v9, 0.0  ;;  %vm957_vm8 = vcmp.eq.s32.totalorder %v675_v59, %v559_v35  ;;  %v357_v21 = vadd.f32 %v341_v14, %v305_v4  ;;  %v371_v22 = vadd.f32 %v370_v16, %v356_v15  ;;  %v171_v54 = vpop.permute.xlu0 %170 }
  0xad   :  { %v240_v41 = vsel %vm957_vm8, %v151_v9, 0.0  ;;  %v307_v23 = vadd.f32 %v291_v17, %v255_v5  ;;  %vm331_vm2 = vcmp.eq.s32.totalorder %v678_v60, %v566_v38  ;;  %vm281_vm12 = vcmp.eq.s32.totalorder %v701_v6, %v561_v36  ;;  %v176_v51 = vpop.permute.xlu1 %175 }
  0xae   :  { %v256_v24 = vadd.f32 %v240_v41, %v188_v20  ;;  %vm958_vm4 = vcmp.eq.s32.totalorder %v648_v53, %v566_v38  ;;  %v292_v28 = vsel %vm276_vm14, %v151_v9, 0.0  ;;  %vm959_vm7 = vcmp.eq.s32.totalorder %v678_v60, %v554_v33 }
  0xaf   :  { %v342_v27 = vsel %vm958_vm4, %v141_v34, 0.0  ;;  %v191_v30 = vsel %vm959_vm7, %v166_v25, 0.0  ;;  %vm960_vm8 = vcmp.eq.s32.totalorder %v678_v60, %v559_v35  ;;  %v372_v37 = vadd.f32 %v371_v22, %v357_v21 }
  0xb0   :  { %v243_v31 = vsel %vm960_vm8, %v166_v25, 0.0  ;;  %v358_v32 = vadd.f32 %v342_v27, %v306_v44  ;;  %v293_v18 = vsel %vm277_vm13, %v156_v8, 0.0  ;;  %v308_v53 = vadd.f32 %v292_v28, %v256_v24 }
  0xb1   :  { %v343_v42 = vsel %vm327_vm10, %v146_v52, 0.0  ;;  %v309_v43 = vadd.f32 %v293_v18, %v257_v19  ;;  %v190_v45 = vsel %vm94_vm0, %v161_v26, 0.0  ;;  %v242_v46 = vsel %vm226_vm1, %v161_v26, 0.0 }
  0xb2   :  { %v359_v48 = vadd.f32 %v343_v42, %v307_v23  ;;  %v373_v49 = vadd.f32 %v372_v37, %v358_v32  ;;  %v259_v50 = vadd.f32 %v243_v31, %v191_v30  ;;  %v258_v34 = vadd.f32 %v242_v46, %v190_v45 }
  0xb3   :  { %v344_v47 = vsel %vm328_vm3, %v151_v9, 0.0  ;;  %vm961_vm14 = vcmp.eq.s32.totalorder %v692_v0, %v561_v36  ;;  %v193_v55 = vsel %vm97_vm6, %v176_v51, 0.0  ;;  %vm962_vm13 = vcmp.eq.s32.totalorder %v701_v6, %v559_v35 }
  0xb4   :  { %v294_v52 = vsel %vm961_vm14, %v161_v26, 0.0  ;;  %v245_v57 = vsel %vm962_vm13, %v176_v51, 0.0  ;;  %vm963_vm0 = vcmp.eq.s32.totalorder %v661_v56, %v566_v38  ;;  %v360_v61 = vadd.f32 %v344_v47, %v308_v53 }
  0xb5   :  { %v345_v58 = vsel %vm963_vm0, %v156_v8, 0.0  ;;  %v374_v62 = vadd.f32 %v373_v49, %v359_v48  ;;  %v310_v59 = vadd.f32 %v294_v52, %v258_v34  ;;  %vm964_vm10 = vcmp.eq.s32.totalorder %v678_v60, %v561_v36 }
  0xb6   :  { %v361_v40 = vadd.f32 %v345_v58, %v309_v43  ;;  %v295_v63 = vsel %vm964_vm10, %v166_v25, 0.0  ;;  %v192_v39 = vsel %vm96_vm5, %v171_v54, 0.0  ;;  %v244_v1 = vsel %vm228_vm11, %v171_v54, 0.0 }
  0xb7   :  { %v375_v2 = vadd.f32 %v374_v62, %v360_v61  ;;  %v311_v3 = vadd.f32 %v295_v63, %v259_v50  ;;  %v261_v56 = vadd.f32 %v245_v57, %v193_v55  ;;  %v260_v4 = vadd.f32 %v244_v1, %v192_v39 }
  0xb8   :  { %v346_v5 = vsel %vm330_vm9, %v161_v26, 0.0  ;;  %v296_v7 = vsel %vm280_vm15, %v171_v54, 0.0  ;;  %vm332_vm1 = vcmp.eq.s32.totalorder %v757_v29, %v566_v38  ;;  %v347_v35 = vsel %vm331_vm2, %v166_v25, 0.0 }
  0xb9   :  { %v362_v8 = vadd.f32 %v346_v5, %v310_v59  ;;  %v376_v9 = vadd.f32 %v375_v2, %v361_v40  ;;  %v312_v33 = vadd.f32 %v296_v7, %v260_v4  ;;  %v297_v10 = vsel %vm281_vm12, %v176_v51, 0.0 }
  0xba   :  { %v363_v0 = vadd.f32 %v347_v35, %v311_v3  ;;  %v313_v12 = vadd.f32 %v297_v10, %v261_v56  ;;  %vm333_vm3 = vcmp.eq.s32.totalorder %v701_v6, %v566_v38  ;;  %v348_v13 = vsel %vm332_vm1, %v171_v54, 0.0 }
  0xbb   :  { %v377_v11 = vadd.f32 %v376_v9, %v362_v8  ;;  %v364_v14 = vadd.f32 %v348_v13, %v312_v33  ;;  %v349_v16 = vsel %vm333_vm3, %v176_v51, 0.0  ;;  %v388_v36 = vstv %s941_s2 }
  0xbc   :  { %v365_v44 = vadd.f32 %v349_v16, %v313_v12 }
  0xbd   :  { %v378_v15 = vadd.f32 %v377_v11, %v363_v0 }
  0xbf   :  { %v379_v29 = vadd.f32 %v378_v15, %v364_v14 }
  0xc1   :  { %v380_v17 = vadd.f32 %v379_v29, %v365_v44 }
  0xc3   :  { %v381_v19 = vrot.slane %v380_v17, 4 }
  0xc5   :  { %v382_v60 = vadd.f32 %v381_v19, %v380_v17 }
  0xc7   :  { %v383_v20 = vrot.slane %v382_v60, 2 }
  0xc9   :  { %v384_v41 = vadd.f32 %v383_v20, %v382_v60 }
  0xcb   :  { %v385_v21 = vrot.slane %v384_v41, 1 }
  0xcd   :  { %v386_v22 = vadd.f32 %v385_v21, %v384_v41 }
  0xcf   :  { %v389_v23 = vadd.f32 %v388_v36, %v386_v22 }
  0xd1   :  { %v415_v24 = vmul.f32 -1.442695, %v389_v23 }
  0xd3   :  { %421 = vpow2.f32 %v415_v24 }
  0xdd   :  { %v422_v38 = vpop.eup %421 }
  0xde   :  { %v393_v6 = vadd.f32 1.0, %v422_v38 }
  0xe0   :  { %423 = vrcp.f32 %v393_v6 }
  0xea   :  { %v424_v25 = vpop.eup %423 }
  0xeb   :  { %396 = vst [vmem:[#allocation6] sm:$0x1] %v424_v25 }
  0xec   :  { %448 = shalt.err (!%p445_p9)
}
  0xed   :  { %s449_s9 = scalar_lea.hbm %s943_s4, 16 }
  0xee   :  { %p450_p10 = scmp.ne.s32.totalorder %s943_s4, %s449_s9  ;;  %p453_p11 = scmp.lt.u32.totalorder %s449_s9, %s943_s4 }
  0xf0   :  { %p455_p12 = pnand %p453_p11, %p450_p10 }
  0xf2   :  { %458 = shalt.err (!%p455_p12)
}
  0xf3   :  { %406 = dma.vmem_to_hbm [thread:$0]  %s404_s5, 16, %s943_s4, [#allocation4]  }
  0xf4   :  { %461 = dma.done.wait [#allocation4], 16  }
  0xf5   :  { %462 = vsyncadd [#allocation4], 4294967280 }
  0xf6   :  { %410 = vsyncpa [#allocation4], 1 }
  0xf7   :  { %411 = vsyncpa [#allocation5], 1 }

</bundles_post_ra>
